<compile_context>
chip_gen: v7x
topology: tpu7x:2x2x1
jax: 0.10.0
libtpu: 0.0.40
codegen_flags: <defaults>
</compile_context>

<pallas_src>
import jax
import jax.numpy as jnp
from jax.experimental import pallas as pl
from jax.experimental.pallas import tpu as pltpu


_MIN_GRID_STEPS = 4  # >= 2 steps per TensorCore on v7x megacore; harmless on v5e/v6e.


def _scale2d_kernel(x_ref, w_ref, b_ref, o_ref):
    # Pure VPU elementwise.  w_ref/b_ref broadcast against x_ref: either per-row
    # (row_tile, 1) columns or a per-lane (1, lane_tile) slab.
    o_ref[...] = (x_ref[...] * w_ref[...] + b_ref[...]).astype(o_ref.dtype)


def _sublane_multiple(dtype) -> int:
    # Sublane packing multiple per dtype width (f32/i32: 8, bf16: 16, int8/fp8: 32).
    return {4: 8, 2: 16, 1: 32}.get(jnp.dtype(dtype).itemsize, 8)


def _vmem_capacity_bytes() -> int:
    try:
        return int(pltpu.get_tpu_info().vmem_capacity_bytes)
    except Exception:
        return 64 << 20  # conservative fallback (v7x per-TensorCore VMEM)


def _choose_tiles(R, L, elem_bytes, param_bytes, sub_mult, target_bytes):
    """Pick (row_tile, lane_tile) for a (R, L) slab.

    row_tile is a multiple of sub_mult (or == R); lane_tile is a multiple of 128
    (or == L).  Neither tile has to divide its axis: the grid uses pl.cdiv and
    Pallas masks the trailing partial blocks, so no wrapper-side padding is needed.
    """
    # Lane tile: prefer the whole row (one contiguous HBM DMA per row block).
    lane_cap = max(128, (target_bytes // (sub_mult * elem_bytes)) // 128 * 128)
    lane_tile = L if L <= lane_cap else lane_cap

    # Row tile: fill the byte budget, rounded down to the sublane multiple.
    rows_budget = max(1, target_bytes // (lane_tile * elem_bytes))
    if R <= sub_mult:
        row_tile = R
    else:
        row_tile = max(sub_mult, (min(rows_budget, R) // sub_mult) * sub_mult)
        # Cap rows so the lane-padded (row_tile, 1) weight/bias VMEM buffers
        # (row_tile x 128 words each, double buffered) stay small.
        param_row_cap = max(
            sub_mult, ((1 << 20) // (128 * param_bytes)) // sub_mult * sub_mult
        )
        row_tile = min(row_tile, param_row_cap)

    # Megacore friendliness: ensure >= _MIN_GRID_STEPS grid steps with a roughly
    # even split of the (parallel) row axis whenever there is enough data.
    if pl.cdiv(R, row_tile) * pl.cdiv(L, lane_tile) < _MIN_GRID_STEPS:
        lane_steps = pl.cdiv(L, lane_tile)
        want_rows = pl.cdiv(_MIN_GRID_STEPS, lane_steps)
        if R > sub_mult and R // sub_mult >= want_rows > 1:
            row_tile = max(sub_mult, ((R // want_rows) // sub_mult) * sub_mult)
        else:
            row_steps = pl.cdiv(R, row_tile)
            want_lanes = pl.cdiv(_MIN_GRID_STEPS, row_steps)
            if L // 128 >= want_lanes > 1:
                lane_tile = max(128, ((L // want_lanes) // 128) * 128)

    return row_tile, lane_tile


def scale2d(x, weight, bias, *, target_bytes=None):
    """x: (N, C, H, W); weight, bias: (1, C, 1, 1). Returns x * weight + bias."""
    N, C, H, W = x.shape
    HW = H * W

    # Match PyTorch/NumPy type promotion (bf16 x with f32 params -> f32 output).
    out_dtype = jnp.result_type(x.dtype, weight.dtype, bias.dtype)
    elem_bytes = max(jnp.dtype(x.dtype).itemsize, jnp.dtype(out_dtype).itemsize)
    param_dtype = jnp.result_type(weight.dtype, bias.dtype)
    param_bytes = jnp.dtype(param_dtype).itemsize
    sub_mult = _sublane_multiple(x.dtype)

    vmem_cap = _vmem_capacity_bytes()
    if target_bytes is None:
        # ~8 MiB blocks: per-step overhead (~0.35us) < 10% even at v7x HBM speed;
        # double-buffered in+out still fits comfortably in 64 MiB VMEM.
        target_bytes = int(min(8 << 20, vmem_cap // 8))

    if HW >= 128:
        # Layout A: one (n, c) plane per row -> per-row (N*C, 1) scale/bias columns
        # (tiny).  Lane axis is the spatial plane; full-row blocks when they fit.
        R, L = N * C, HW
        x2 = x.reshape(R, L)
        w2 = jnp.broadcast_to(weight.reshape(1, C, 1), (N, C, 1)).reshape(R, 1)
        b2 = jnp.broadcast_to(bias.reshape(1, C, 1), (N, C, 1)).reshape(R, 1)
        param_is_row = True
    else:
        # Layout B (small spatial planes, e.g. 7x7): pack all channels of one
        # batch item along lanes so vregs / HBM bursts are not mostly empty.
        # scale/bias become a per-lane slab of length C*H*W reused across rows.
        R, L = N, C * HW
        x2 = x.reshape(R, L)
        w2 = jnp.broadcast_to(weight.reshape(C, 1), (C, HW)).reshape(1, L)
        b2 = jnp.broadcast_to(bias.reshape(C, 1), (C, HW)).reshape(1, L)
        param_is_row = False

    row_tile, lane_tile = _choose_tiles(
        R, L, elem_bytes, param_bytes, sub_mult, target_bytes
    )
    grid = (pl.cdiv(R, row_tile), pl.cdiv(L, lane_tile))

    if param_is_row:
        # Block index invariant along the inner (lane) grid axis -> the pipeline
        # does not re-DMA the params per lane step.
        w_spec = pl.BlockSpec((row_tile, 1), lambda i, j: (i, 0))
        b_spec = pl.BlockSpec((row_tile, 1), lambda i, j: (i, 0))
        # (row_tile, 1) blocks are lane-padded to 128 words in VMEM.
        param_vmem = 2 * 2 * row_tile * 128 * param_bytes
    else:
        w_spec = pl.BlockSpec((1, lane_tile), lambda i, j: (0, j))
        b_spec = pl.BlockSpec((1, lane_tile), lambda i, j: (0, j))
        # (1, lane_tile) blocks are sublane-padded to 8 rows in VMEM.
        param_vmem = 2 * 2 * 8 * lane_tile * param_bytes

    in_block = row_tile * lane_tile * jnp.dtype(x.dtype).itemsize
    out_block = row_tile * lane_tile * jnp.dtype(out_dtype).itemsize
    need = 2 * (in_block + out_block) + param_vmem + (2 << 20)
    vmem_limit = int(min(max(vmem_cap - (8 << 20), 32 << 20), max(32 << 20, need)))

    cost = pl.CostEstimate(
        flops=2 * R * L,
        transcendentals=0,
        bytes_accessed=(
            R * L * (jnp.dtype(x.dtype).itemsize + jnp.dtype(out_dtype).itemsize)
            + (w2.size + b2.size) * param_bytes
        ),
    )

    out2 = pl.pallas_call(
        _scale2d_kernel,
        out_shape=jax.ShapeDtypeStruct((R, L), out_dtype),
        grid_spec=pltpu.PrefetchScalarGridSpec(
            num_scalar_prefetch=0,
            grid=grid,
            in_specs=[
                pl.BlockSpec((row_tile, lane_tile), lambda i, j: (i, j)),  # x
                w_spec,                                                    # weight
                b_spec,                                                    # bias
            ],
            out_specs=pl.BlockSpec((row_tile, lane_tile), lambda i, j: (i, j)),
        ),
        compiler_params=pltpu.CompilerParams(
            dimension_semantics=("parallel", "parallel"),
            vmem_limit_bytes=vmem_limit,
        ),
        cost_estimate=cost,
    )(x2, w2, b2)

    return out2.reshape(N, C, H, W)


if __name__ == "__main__":
    key = jax.random.PRNGKey(0)
    scale2d_jit = jax.jit(scale2d)

    # (N, C, H, W) cases: 128-multiple plane, non-128-multiple plane (no pad/slice
    # path anymore), and a small plane (< 128) exercising the packed layout.
    cases = [(2, 4, 16, 16), (2, 4, 20, 20), (2, 3, 7, 7)]
    for N, C, H, W in cases:
        key, kx, kw, kb = jax.random.split(key, 4)
        x = jax.random.normal(kx, (N, C, H, W), dtype=jnp.float32)
        weight = jax.random.normal(kw, (1, C, 1, 1), dtype=jnp.float32)  # nn.Parameter shape
        bias = jax.random.normal(kb, (1, C, 1, 1), dtype=jnp.float32)

        out = jax.block_until_ready(scale2d_jit(x, weight, bias))

        ref = x * weight + bias  # PyTorch broadcasting semantics
        assert out.shape == (N, C, H, W)
        assert out.dtype == ref.dtype
        assert jnp.allclose(out, ref, atol=1e-6, rtol=1e-6)

    print("KERNEL_OK")
</pallas_src>

<mosaic_0001>
module attributes {stable_mosaic.version = 11 : i64} {
  func.func @_scale2d_kernel(%arg0: i32, %arg1: i32, %arg2: memref<8x256xf32, #tpu.memory_space<vmem>>, %arg3: memref<8x1xf32, #tpu.memory_space<vmem>>, %arg4: memref<8x1xf32, #tpu.memory_space<vmem>>, %arg5: memref<8x256xf32, #tpu.memory_space<vmem>>) attributes {dimension_semantics = [#tpu.dimension_semantics<parallel>, #tpu.dimension_semantics<parallel>], iteration_bounds = array<i64: 1, 1>, scalar_prefetch = 0 : i64, scratch_operands = 0 : i64, tpu.core_type = #tpu.core_type<tc>, window_params = [{transform_indices = @transform_0, window_bounds = array<i64: 8, 256>}, {transform_indices = @transform_1, window_bounds = array<i64: 8, 1>}, {transform_indices = @transform_2, window_bounds = array<i64: 8, 1>}, {transform_indices = @transform_3, window_bounds = array<i64: 8, 256>}]} {
    %c0 = arith.constant 0 : index
    %c0_0 = arith.constant 0 : index
    %0 = vector.load %arg2[%c0, %c0_0] : memref<8x256xf32, #tpu.memory_space<vmem>>, vector<8x256xf32>
    %c0_1 = arith.constant 0 : index
    %c0_2 = arith.constant 0 : index
    %1 = vector.load %arg3[%c0_1, %c0_2] : memref<8x1xf32, #tpu.memory_space<vmem>>, vector<8x1xf32>
    %2 = vector.broadcast %1 : vector<8x1xf32> to vector<8x256xf32>
    %3 = arith.mulf %0, %2 : vector<8x256xf32>
    %c0_3 = arith.constant 0 : index
    %c0_4 = arith.constant 0 : index
    %4 = vector.load %arg4[%c0_3, %c0_4] : memref<8x1xf32, #tpu.memory_space<vmem>>, vector<8x1xf32>
    %5 = vector.broadcast %4 : vector<8x1xf32> to vector<8x256xf32>
    %6 = arith.addf %3, %5 : vector<8x256xf32>
    %c0_5 = arith.constant 0 : index
    %c0_6 = arith.constant 0 : index
    %7 = vector.load %arg5[%c0_5, %c0_6] : memref<8x256xf32, #tpu.memory_space<vmem>>, vector<8x256xf32>
    tpu.vector_store %arg5[%c0_5, %c0_6], %6 {strides = array<i32>} : memref<8x256xf32, #tpu.memory_space<vmem>>, vector<8x256xf32>,
    return
  }
  func.func @transform_0(%arg0: i32, %arg1: i32) -> (i32, i32) {
    %c0_i32 = arith.constant 0 : i32
    return %arg0, %arg1 : i32, i32
  }
  func.func @transform_1(%arg0: i32, %arg1: i32) -> (i32, i32) {
    %c0_i32 = arith.constant 0 : i32
    %c0_i32_0 = arith.constant 0 : i32
    return %arg0, %c0_i32 : i32, i32
  }
  func.func @transform_2(%arg0: i32, %arg1: i32) -> (i32, i32) {
    %c0_i32 = arith.constant 0 : i32
    %c0_i32_0 = arith.constant 0 : i32
    return %arg0, %c0_i32 : i32, i32
  }
  func.func @transform_3(%arg0: i32, %arg1: i32) -> (i32, i32) {
    %c0_i32 = arith.constant 0 : i32
    return %arg0, %arg1 : i32, i32
  }
}

</mosaic_0001>

<bundles_post_ra>
// kernel: scale2d.1
= control target key start
LH: loop header
LB: loop body
LE: loop exit
PB: predicated region body
PF: predicated region fallthrough
CT: control target
= control target key end

     0   :  { %v40_v0 = vmov 0   ;;  %s79_s1 = inlined_call_operand.vmem [shape: f32[8,1], index: 1, kind: input, shape index: {}]   ;;  %s80_s2 = inlined_call_operand.vmem [shape: f32[8,1], index: 2, kind: input, shape index: {}]   ;;  %s81_s0 = inlined_call_operand.vmem [shape: f32[8,256], index: 0, kind: input, shape index: {}]   ;;  %s82_s3 = inlined_call_operand.vmem [shape: f32[8,256], index: 3, kind: output, shape index: {}]  }
   0x1   :  { %39 = vset.pattern.permute.xlu0 %v40_v0  ;;  %v16_v1 = vld [vmem:[%s79_s1] sm:$0xff]  ;;  %v15_v5 = vld [vmem:[%s81_s0 + $0x8] sm:$0xff] }
   0x2   :  { %19 = vperm.xlu0 %39, %v16_v1   ;;  %v24_v2 = vld [vmem:[%s80_s2] sm:$0xff] }
   0x3   :  { %v14_v4 = vld [vmem:[%s81_s0] sm:$0xff] }
   0x6   :  { %27 = vperm.xlu0 %39, %v24_v2  }
  0x81   :  { %v20_v3 = vpop.permute.xlu0 %19 }
  0x82   :  { %v22_v6 = vmul.f32 %v20_v3, %v14_v4  ;;  %v23_v7 = vmul.f32 %v20_v3, %v15_v5 }
  0x85   :  { %v28_v8 = vpop.permute.xlu0 %27 }
  0x86   :  { %v30_v9 = vadd.f32 %v28_v8, %v22_v6  ;;  %v31_v10 = vadd.f32 %v28_v8, %v23_v7 }
  0x88   :  { %32 = vst [vmem:[%s82_s3] sm:$0xff] %v30_v9  ;;  %33 = vst [vmem:[%s82_s3 + $0x8] sm:$0xff] %v31_v10 }

</bundles_post_ra>
